<compile_context>
chip_gen: v5e
topology: v5e:2x2
jax: 0.10.0
libtpu: 0.0.40
codegen_flags: <defaults>
</compile_context>

<pallas_src>
import math
from functools import partial

import jax
import jax.numpy as jnp
from jax import lax
from jax.experimental import pallas as pl
from jax.experimental.pallas import tpu as pltpu


def _sdpa_kernel(q_ref, k_ref, v_ref, ctx_ref, attn_ref, *, scale, approx_recip):
    # blocks: q_ref/ctx_ref (1, tq, d), k_ref/v_ref (1, k_len, d), attn_ref (1, tq, k_len)
    q = q_ref[0] * scale                      # fold 1/sqrt(dim) into the small operand
    k = k_ref[0]
    v = v_ref[0]

    # QK^T without materializing k.T: contract over the shared last dim (d_model).
    score = lax.dot_general(
        q, k,
        dimension_numbers=(((1,), (1,)), ((), ())),
        preferred_element_type=jnp.float32)   # (tq, k_len) f32 accumulation

    # numerically stable softmax along k
    m = jnp.max(score, axis=-1, keepdims=True)
    e = jnp.exp(score - m)
    denom = jnp.sum(e, axis=-1, keepdims=True)
    if approx_recip:
        attn = e * pl.reciprocal(denom, approx=True)      # EUP divide (off the VALU)
    else:
        attn = e / denom

    ctx = jnp.dot(attn.astype(v.dtype), v, preferred_element_type=jnp.float32)

    attn_ref[0] = attn.astype(attn_ref.dtype)
    ctx_ref[0] = ctx.astype(ctx_ref.dtype)


def _sdpa_masked_kernel(q_ref, k_ref, v_ref, mask_ref, ctx_ref, attn_ref, *,
                        scale, approx_recip):
    q = q_ref[0] * scale
    k = k_ref[0]
    v = v_ref[0]
    mask = mask_ref[0]                        # (mq, mk) int8; broadcasts against (tq, k_len)

    score = lax.dot_general(
        q, k,
        dimension_numbers=(((1,), (1,)), ((), ())),
        preferred_element_type=jnp.float32)
    # masked_fill_(mask, -inf); a fully masked row yields NaN (same as PyTorch).
    score = jnp.where(mask != 0, -jnp.inf, score)

    m = jnp.max(score, axis=-1, keepdims=True)
    e = jnp.exp(score - m)
    denom = jnp.sum(e, axis=-1, keepdims=True)
    if approx_recip:
        attn = e * pl.reciprocal(denom, approx=True)
    else:
        attn = e / denom

    ctx = jnp.dot(attn.astype(v.dtype), v, preferred_element_type=jnp.float32)

    attn_ref[0] = attn.astype(attn_ref.dtype)
    ctx_ref[0] = ctx.astype(ctx_ref.dtype)


def _vmem_capacity_bytes():
    try:
        return int(pltpu.get_tpu_info().vmem_capacity_bytes)
    except Exception:
        return 64 * 1024 * 1024               # conservative (v7x-sized) fallback


def scaled_dot_product_attention(query, key, value, mask=None, *, dim=None,
                                 tq=None, approx_softmax_recip=True):
    """
    query: (B, q_len, d_model); key/value: (B, k_len, d_model)
    mask (optional): broadcastable to (B, q_len, k_len) OR same numel
                     (PyTorch's mask.view(score.size()) behavior); nonzero/True => masked.
                     Fully-masked rows yield NaN (matches torch masked_fill + softmax).
    approx_softmax_recip: use the EUP approximate reciprocal for the softmax
                          denominator (~1e-3 deviation); set False for closer parity.
    Returns (context, attn); attn is in the input dtype.
    """
    B, q_len, d_model = query.shape
    _, k_len, _ = key.shape
    if dim is None:
        dim = d_model
    scale = 1.0 / math.sqrt(dim)
    out_dtype = query.dtype
    attn_dtype = query.dtype
    itemsize = jnp.dtype(query.dtype).itemsize
    attn_itemsize = jnp.dtype(attn_dtype).itemsize

    # ---- mask preprocessing: keep broadcast axes compact (no B*q*k materialization) ----
    mask_i8 = None
    mB = mQ = mK = None
    if mask is not None:
        m_arr = jnp.asarray(mask)
        if m_arr.shape != (B, q_len, k_len) and m_arr.size == B * q_len * k_len:
            m_arr = m_arr.reshape(B, q_len, k_len)        # torch .view(score.size())
        while m_arr.ndim < 3:
            m_arr = m_arr[None]
        if m_arr.ndim > 3:
            m_arr = m_arr.reshape((-1,) + m_arr.shape[-2:])
        mB, mQ, mK = m_arr.shape
        if mB not in (1, B) or mQ not in (1, q_len) or mK not in (1, k_len):
            m_arr = jnp.broadcast_to(m_arr, (B, q_len, k_len))
            mB, mQ, mK = B, q_len, k_len
        mask_i8 = (m_arr != 0).astype(jnp.int8)           # compact int8 (tiny pass if broadcast)

    # ---- sublane multiple for the q tile (dtype packing; int8 mask tiled along q -> 32) ----
    sublane = {4: 8, 2: 16, 1: 32}.get(itemsize, 8)
    if mask_i8 is not None and mQ == q_len and q_len > 1:
        sublane = max(sublane, 32)

    # ---- chip-aware VMEM budget & q-tile selection ----
    vmem_cap = _vmem_capacity_bytes()
    budget = int(0.80 * vmem_cap)                         # headroom for compiler scratch

    def mask_blk_bytes(tq_):
        if mask_i8 is None:
            return 0
        blk_q = tq_ if mQ == q_len else 1
        return blk_q * mK                                  # int8

    def vmem_need(tq_, kv_bufs):
        q_b = 2 * tq_ * d_model * itemsize                 # q (double buffered)
        kv_b = kv_bufs * 2 * k_len * d_model * itemsize    # K and V, resident per batch
        ctx_b = 2 * tq_ * d_model * itemsize
        attn_b = 2 * tq_ * k_len * attn_itemsize
        m_b = 2 * mask_blk_bytes(tq_)
        live = 4 * tq_ * k_len * 4 + 2 * tq_ * d_model * 4  # f32 score/exp/attn + f32 ctx acc
        return q_b + kv_b + ctx_b + attn_b + m_b + live

    if tq is not None:
        tq = int(min(tq, q_len))
        if tq < q_len:
            tq = max(sublane, (tq // sublane) * sublane)
        kv_bufs = 2 if vmem_need(tq, 2) <= budget else 1
    else:
        cands = []
        if q_len <= 512:
            cands.append(q_len)                            # single q tile if it fits
        for c in (512, 256, 128):
            if c < q_len:
                cands.append(c)
        if not cands:
            cands.append(min(q_len, 128))
        tq, kv_bufs = None, 2
        for bufs in (2, 1):     # bufs=1 => single-buffered K/V (pl.Buffered(1)) on VMEM-tight chips
            for c in cands:
                if vmem_need(c, bufs) <= budget:
                    tq, kv_bufs = c, bufs
                    break
            if tq is not None:
                break
        if tq is None:
            # TODO(synk): k-tiled / online-softmax fallback for very long k_len that cannot
            # keep K/V plus an f32 (tq, k_len) score tile resident in VMEM.
            tq, kv_bufs = cands[-1], 1

    n_q_tiles = pl.cdiv(q_len, tq)

    # ---- BlockSpecs: tile q (Pallas masks the ragged last q-block), K/V resident per batch ----
    q_spec = pl.BlockSpec((1, tq, d_model), lambda b, i: (b, i, 0))
    kv_kwargs = {}
    if kv_bufs == 1:
        # K/V are revisited across the inner q axis; single-buffering them only exposes a DMA
        # at batch transitions and halves their VMEM footprint (important on 64 MiB v7x).
        kv_kwargs["pipeline_mode"] = pl.Buffered(1)
    k_spec = pl.BlockSpec((1, k_len, d_model), lambda b, i: (b, 0, 0), **kv_kwargs)
    v_spec = pl.BlockSpec((1, k_len, d_model), lambda b, i: (b, 0, 0), **kv_kwargs)
    ctx_spec = pl.BlockSpec((1, tq, d_model), lambda b, i: (b, i, 0))
    attn_spec = pl.BlockSpec((1, tq, k_len), lambda b, i: (b, i, 0))
    # TODO(synk): if k_len is not a multiple of 128, a lane-dense (padded) attn layout would
    # turn the attn writeback into full vst, at the cost of an extra wrapper slicing pass.

    out_shape = (
        jax.ShapeDtypeStruct((B, q_len, d_model), out_dtype),   # context (true q_len, no pad/slice)
        jax.ShapeDtypeStruct((B, q_len, k_len), attn_dtype),    # attn
    )

    vmem_limit = int(min(max(vmem_need(tq, kv_bufs) + (8 << 20), 32 << 20),
                         int(0.90 * vmem_cap)))
    vmem_limit = max(vmem_limit, 16 << 20)

    # Batch axis "parallel": multi-core chips shard batches (each core keeps its own K/V
    # resident) instead of splitting q (which would duplicate K/V fetch + residency).
    dims_sem = ("parallel", "arbitrary") if B > 1 else ("parallel", "parallel")
    compiler_params = pltpu.CompilerParams(
        dimension_semantics=dims_sem,
        vmem_limit_bytes=vmem_limit)

    if mask_i8 is None:
        kernel = partial(_sdpa_kernel, scale=scale, approx_recip=approx_softmax_recip)
        in_specs = [q_spec, k_spec, v_spec]
        operands = (query, key, value)
    else:
        blk_q = tq if mQ == q_len else 1
        m_spec = pl.BlockSpec(
            (1, blk_q, mK),
            lambda b, i: (b if mB == B else 0, i if mQ == q_len else 0, 0))
        kernel = partial(_sdpa_masked_kernel, scale=scale, approx_recip=approx_softmax_recip)
        in_specs = [q_spec, k_spec, v_spec, m_spec]
        operands = (query, key, value, mask_i8)

    ctx, attn = pl.pallas_call(
        kernel,
        out_shape=out_shape,
        grid_spec=pltpu.PrefetchScalarGridSpec(
            num_scalar_prefetch=0,
            grid=(B, n_q_tiles),
            in_specs=in_specs,
            out_specs=[ctx_spec, attn_spec],
        ),
        compiler_params=compiler_params,
    )(*operands)
    return ctx, attn


def _reference(query, key, value, mask=None, *, dim):
    score = jnp.einsum("bqd,bkd->bqk", query, key) / math.sqrt(dim)
    if mask is not None:
        m = jnp.broadcast_to(jnp.asarray(mask), score.shape)
        score = jnp.where(m != 0, -jnp.inf, score)
    attn = jax.nn.softmax(score, axis=-1)
    context = jnp.einsum("bqk,bkd->bqd", attn, value)
    return context, attn


if __name__ == "__main__":
    # --- small shapes consistent with the module convention: (batch, len, d_model) ---
    B, q_len, k_len, d_model = 2, 8, 8, 32
    key0 = jax.random.PRNGKey(0)
    kq, kk, kv, km, kq2, kk2, kv2 = jax.random.split(key0, 7)
    query = jax.random.normal(kq, (B, q_len, d_model), dtype=jnp.float32)
    key_t = jax.random.normal(kk, (B, k_len, d_model), dtype=jnp.float32)
    value = jax.random.normal(kv, (B, k_len, d_model), dtype=jnp.float32)

    # tolerances allow for the approximate (EUP) reciprocal in the softmax
    ATOL = RTOL = 2e-3

    # --- no-mask path ---
    ctx, attn = scaled_dot_product_attention(query, key_t, value, dim=d_model)
    jax.block_until_ready((ctx, attn))
    ref_ctx, ref_attn = _reference(query, key_t, value, dim=d_model)
    assert ctx.shape == (B, q_len, d_model) and attn.shape == (B, q_len, k_len)
    assert jnp.allclose(ctx, ref_ctx, atol=ATOL, rtol=RTOL)
    assert jnp.allclose(attn, ref_attn, atol=ATOL, rtol=RTOL)

    # --- masked path: compact broadcastable (B, 1, k_len) mask (never fully masked) ---
    mask = (jax.random.uniform(km, (B, 1, k_len)) < 0.3).at[:, :, 0].set(False)
    ctx_m, attn_m = scaled_dot_product_attention(query, key_t, value, mask=mask, dim=d_model)
    jax.block_until_ready((ctx_m, attn_m))
    ref_ctx_m, ref_attn_m = _reference(query, key_t, value, mask, dim=d_model)
    assert jnp.allclose(ctx_m, ref_ctx_m, atol=ATOL, rtol=RTOL)
    assert jnp.allclose(attn_m, ref_attn_m, atol=ATOL, rtol=RTOL)

    # --- masked path: full-size (B, q_len, k_len) mask (PyTorch mask.view semantics) ---
    mask_full = jnp.broadcast_to(mask, (B, q_len, k_len))
    ctx_f, attn_f = scaled_dot_product_attention(query, key_t, value, mask=mask_full, dim=d_model)
    jax.block_until_ready((ctx_f, attn_f))
    assert jnp.allclose(ctx_f, ref_ctx_m, atol=ATOL, rtol=RTOL)
    assert jnp.allclose(attn_f, ref_attn_m, atol=ATOL, rtol=RTOL)

    # --- larger lane-dense case; default (single q-tile) and forced ragged q tiling ---
    B2, q2, k2, d2 = 2, 160, 128, 128
    query2 = jax.random.normal(kq2, (B2, q2, d2), dtype=jnp.float32)
    key2 = jax.random.normal(kk2, (B2, k2, d2), dtype=jnp.float32)
    value2 = jax.random.normal(kv2, (B2, k2, d2), dtype=jnp.float32)
    ref_ctx2, ref_attn2 = _reference(query2, key2, value2, dim=d2)

    ctx2, attn2 = scaled_dot_product_attention(query2, key2, value2, dim=d2)
    jax.block_until_ready((ctx2, attn2))
    assert ctx2.shape == (B2, q2, d2) and attn2.shape == (B2, q2, k2)
    assert jnp.allclose(ctx2, ref_ctx2, atol=ATOL, rtol=RTOL)
    assert jnp.allclose(attn2, ref_attn2, atol=ATOL, rtol=RTOL)

    # explicit tq=128 forces a ragged last q-block (160 = 128 + 32) with no wrapper padding
    ctx3, attn3 = scaled_dot_product_attention(query2, key2, value2, dim=d2, tq=128)
    jax.block_until_ready((ctx3, attn3))
    assert jnp.allclose(ctx3, ref_ctx2, atol=ATOL, rtol=RTOL)
    assert jnp.allclose(attn3, ref_attn2, atol=ATOL, rtol=RTOL)

    print("KERNEL_OK")
</pallas_src>

<mosaic_0001>
module attributes {stable_mosaic.version = 11 : i64} {
  func.func @_sdpa_kernel(%arg0: i32, %arg1: i32, %arg2: memref<1x8x32xf32, #tpu.memory_space<vmem>>, %arg3: memref<1x8x32xf32, #tpu.memory_space<vmem>>, %arg4: memref<1x8x32xf32, #tpu.memory_space<vmem>>, %arg5: memref<1x8x32xf32, #tpu.memory_space<vmem>>, %arg6: memref<1x8x8xf32, #tpu.memory_space<vmem>>) attributes {dimension_semantics = [#tpu.dimension_semantics<parallel>, #tpu.dimension_semantics<arbitrary>], iteration_bounds = array<i64: 2, 1>, scalar_prefetch = 0 : i64, scratch_operands = 0 : i64, tpu.core_type = #tpu.core_type<tc>, window_params = [{transform_indices = @transform_0, window_bounds = array<i64: 1, 8, 32>}, {transform_indices = @transform_1, window_bounds = array<i64: 1, 8, 32>}, {transform_indices = @transform_2, window_bounds = array<i64: 1, 8, 32>}, {transform_indices = @transform_3, window_bounds = array<i64: 1, 8, 32>}, {transform_indices = @transform_4, window_bounds = array<i64: 1, 8, 8>}]} {
    %c0 = arith.constant 0 : index
    %c0_0 = arith.constant 0 : index
    %c0_1 = arith.constant 0 : index
    %0 = vector.load %arg2[%c0, %c0_0, %c0_1] : memref<1x8x32xf32, #tpu.memory_space<vmem>>, vector<1x8x32xf32>
    %1 = vector.shape_cast %0 : vector<1x8x32xf32> to vector<8x32xf32>
    %cst = arith.constant 0.176776692 : f32
    %2 = vector.broadcast %cst : f32 to vector<8x32xf32>
    %3 = arith.mulf %1, %2 : vector<8x32xf32>
    %c0_2 = arith.constant 0 : index
    %c0_3 = arith.constant 0 : index
    %c0_4 = arith.constant 0 : index
    %4 = vector.load %arg3[%c0_2, %c0_3, %c0_4] : memref<1x8x32xf32, #tpu.memory_space<vmem>>, vector<1x8x32xf32>
    %5 = vector.shape_cast %4 : vector<1x8x32xf32> to vector<8x32xf32>
    %c0_5 = arith.constant 0 : index
    %c0_6 = arith.constant 0 : index
    %c0_7 = arith.constant 0 : index
    %6 = vector.load %arg4[%c0_5, %c0_6, %c0_7] : memref<1x8x32xf32, #tpu.memory_space<vmem>>, vector<1x8x32xf32>
    %7 = vector.shape_cast %6 : vector<1x8x32xf32> to vector<8x32xf32>
    %cst_8 = arith.constant dense<0.000000e+00> : vector<8x8xf32>
    %8 = tpu.matmul %3, %5, %cst_8 {dimension_numbers = #tpu.dot_dimension_numbers<[1], [1], [0], [0], [0, 0, 1, 0], [], []>} : vector<8x32xf32>, vector<8x32xf32>, vector<8x8xf32> -> vector<8x8xf32>
    %cst_9 = arith.constant dense<0xFF800000> : vector<8xf32>
    %9 = vector.multi_reduction <maximumf>, %8, %cst_9 [1] : vector<8x8xf32> to vector<8xf32>
    %10 = vector.shape_cast %9 : vector<8xf32> to vector<8x1xf32>
    %11 = vector.broadcast %10 : vector<8x1xf32> to vector<8x8xf32>
    %12 = arith.subf %8, %11 : vector<8x8xf32>
    %13 = math.exp %12 : vector<8x8xf32>
    %cst_10 = arith.constant dense<0.000000e+00> : vector<8xf32>
    %14 = vector.multi_reduction <add>, %13, %cst_10 [1] : vector<8x8xf32> to vector<8xf32>
    %15 = vector.shape_cast %14 : vector<8xf32> to vector<8x1xf32>
    %16 = tpu.reciprocal %15 {approx = true} : vector<8x1xf32> -> vector<8x1xf32>
    %17 = vector.broadcast %16 : vector<8x1xf32> to vector<8x8xf32>
    %18 = arith.mulf %13, %17 : vector<8x8xf32>
    %cst_11 = arith.constant dense<0.000000e+00> : vector<8x32xf32>
    %19 = tpu.matmul %18, %7, %cst_11 {dimension_numbers = #tpu.dot_dimension_numbers<[1], [0], [0], [1], [0, 0, 1, 1], [], []>} : vector<8x8xf32>, vector<8x32xf32>, vector<8x32xf32> -> vector<8x32xf32>
    %c0_12 = arith.constant 0 : index
    %c0_13 = arith.constant 0 : index
    %c0_14 = arith.constant 0 : index
    %20 = vector.load %arg6[%c0_12, %c0_13, %c0_14] : memref<1x8x8xf32, #tpu.memory_space<vmem>>, vector<1x8x8xf32>
    %21 = vector.shape_cast %20 : vector<1x8x8xf32> to vector<8x8xf32>
    %22 = vector.shape_cast %18 : vector<8x8xf32> to vector<1x8x8xf32>
    tpu.vector_store %arg6[%c0_12, %c0_13, %c0_14], %22 {strides = array<i32>} : memref<1x8x8xf32, #tpu.memory_space<vmem>>, vector<1x8x8xf32>,
    %c0_15 = arith.constant 0 : index
    %c0_16 = arith.constant 0 : index
    %c0_17 = arith.constant 0 : index
    %23 = vector.load %arg5[%c0_15, %c0_16, %c0_17] : memref<1x8x32xf32, #tpu.memory_space<vmem>>, vector<1x8x32xf32>
    %24 = vector.shape_cast %23 : vector<1x8x32xf32> to vector<8x32xf32>
    %25 = vector.shape_cast %19 : vector<8x32xf32> to vector<1x8x32xf32>
    tpu.vector_store %arg5[%c0_15, %c0_16, %c0_17], %25 {strides = array<i32>} : memref<1x8x32xf32, #tpu.memory_space<vmem>>, vector<1x8x32xf32>,
    return
  }
  func.func @transform_0(%arg0: i32, %arg1: i32) -> (i32, i32, i32) {
    %c0_i32 = arith.constant 0 : i32
    %c0_i32_0 = arith.constant 0 : i32
    return %arg0, %arg1, %c0_i32 : i32, i32, i32
  }
  func.func @transform_1(%arg0: i32, %arg1: i32) -> (i32, i32, i32) {
    %c0_i32 = arith.constant 0 : i32
    %c0_i32_0 = arith.constant 0 : i32
    %c0_i32_1 = arith.constant 0 : i32
    return %arg0, %c0_i32, %c0_i32_0 : i32, i32, i32
  }
  func.func @transform_2(%arg0: i32, %arg1: i32) -> (i32, i32, i32) {
    %c0_i32 = arith.constant 0 : i32
    %c0_i32_0 = arith.constant 0 : i32
    %c0_i32_1 = arith.constant 0 : i32
    return %arg0, %c0_i32, %c0_i32_0 : i32, i32, i32
  }
  func.func @transform_3(%arg0: i32, %arg1: i32) -> (i32, i32, i32) {
    %c0_i32 = arith.constant 0 : i32
    %c0_i32_0 = arith.constant 0 : i32
    return %arg0, %arg1, %c0_i32 : i32, i32, i32
  }
  func.func @transform_4(%arg0: i32, %arg1: i32) -> (i32, i32, i32) {
    %c0_i32 = arith.constant 0 : i32
    %c0_i32_0 = arith.constant 0 : i32
    return %arg0, %arg1, %c0_i32 : i32, i32, i32
  }
}

</mosaic_0001>

<bundles_post_ra>
// kernel: tpu_custom_call.1
= control target key start
LH: loop header
LB: loop body
LE: loop exit
PB: predicated region body
PF: predicated region fallthrough
CT: control target
= control target key end

     0   :  { %s1103_s0 = inlined_call_operand.hbm [shape: f32[2,8,32], index: 0, kind: input, shape index: {}]   ;;  %s1104_s1 = inlined_call_operand.hbm [shape: f32[2,8,32], index: 1, kind: input, shape index: {}]   ;;  %s1105_s2 = inlined_call_operand.hbm [shape: f32[2,8,32], index: 2, kind: input, shape index: {}]   ;;  %s1106_s3 = inlined_call_operand.hbm [shape: f32[2,8,32], index: 3, kind: output, shape index: {0}]   ;;  %s1107_s4 = inlined_call_operand.hbm [shape: f32[2,8,8], index: 4, kind: output, shape index: {1}]  }
   0x1   :  { %1111 = sst [smem:[#allocation19_spill]] %s1104_s1 }
   0x2   :  { %10 = vsyncpa [#allocation3], 0 }
   0x3   :  { %12 = vsyncpa [#allocation3 + $0x1], 0 }
   0x4   :  { %13 = vsyncpa [#allocation6], 0 }
   0x5   :  { %15 = vsyncpa [#allocation6 + $0x1], 0 }
   0x6   :  { %16 = vsyncpa [#allocation4], 0 }
   0x7   :  { %18 = vsyncpa [#allocation4 + $0x1], 0 }
   0x8   :  { %19 = vsyncpa [#allocation10], 0 }
   0x9   :  { %21 = vsyncpa [#allocation10 + $0x1], 0  ;;  %s923_s15 = smov 0   ;;  %s925_s16 = smov 0  }
   0xa   :  { %s927_s17 = smov 0   ;;  %s929_s18 = smov 0  }
   0xb   :  { %s931_s19 = smov 0   ;;  %s933_s20 = smov 0  }
   0xc LB: > { %1112 = sst [smem:[#allocation15_spill]] %s884_s17  ;;  %s954_s21 = sadd.s32 4294967295, %s896_s20   ;;  %s896_s20 = sphi %s933_s20, %s27_s20   ;;  %s892_s19 = sphi %s931_s19, %s1126_s19   ;;  %s888_s18 = sphi %s929_s18, %s1125_s18   ;;  %s884_s17 = sphi %s927_s17, %s1124_s17   ;;  %s880_s16 = sphi %s925_s16, %s1128_s16   ;;  %s876_s15 = sphi %s923_s15, %s1127_s15  }
   0xd   : > { %1113 = sst [smem:[#allocation16_spill]] %s892_s19  ;;  %s583_s22 = sadd.s32 4294967294, %s896_s20  }
   0xe   : > { %s39_s23 = sadd.s32 1, %s892_s19  ;;  %s48_s24 = sadd.s32 1, %s884_s17 }
   0xf   : > { %p41_p0 = scmp.ge.s32.totalorder %s39_s23, 2  ;;  %p55_p1 = scmp.ne.s32.totalorder %s884_s17, %s880_s16 }
  0x10   : > { %p56_p2 = scmp.eq.s32.totalorder %s896_s20, 0  ;;  %p61_p3 = scmp.ne.s32.totalorder %s880_s16, %s876_s15 }
  0x11   : > { %s1130_s23 = smov (%p41_p0, %s39_s23), 0  ;;  %p62_p5 = scmp.eq.s32.totalorder %s954_s21, 0 }
  0x12   : > { %1114 = sst [smem:[#allocation17_spill]] %s1130_s23  ;;  %p966_p4 = por %p56_p2, %p55_p1 }
  0x13   : > { %s43_s26 = ssub.s32 %s892_s19, %s1130_s23  ;;  %p139_p6 = scmp.eq.s32.totalorder %s954_s21, 1 }
  0x14   : > { %p46_p7 = scmp.eq.s32.totalorder %s43_s26, 0  ;;  %p974_p8 = por %p62_p5, %p61_p3 }
  0x15   : > { %p978_p9 = por %p139_p6, %p55_p1  ;;  %p145_p10 = scmp.eq.s32.totalorder %s583_s22, 1 }
  0x16   : > { %s983_s29 = scalar_select %p46_p7, %s884_s17, %s48_s24  }
  0x17   : > { %p985_p11 = por %p145_p10, %p61_p3  ;;  %p585_p12 = scmp.ge.s32.totalorder %s896_s20, 2 }
  0x18   : > { %1118 = sst [smem:[#allocation18_spill]] %s983_s29  ;;  %p634_p13 = scmp.lt.s32.totalorder %s896_s20, 2 }
  0x19   : > { %s193_s5 = sand.u32 1, %s884_s17   ;;  %s587_s7 = sshll.u32 %s892_s19, 3 }
  0x1a   : > { %s586_s6 = sshll.u32 %s193_s5, 3  ;;  %p995_p0 = pnand %p634_p13, %p966_p4 }
  0x1b   : > { %s213_s9 = sand.u32 1, %s896_s20   ;;  %s1121_s1 = sld [smem:[#allocation19_spill]] }
  0x1c   : > { %s217_s14 = scalar_lea.vmem [#allocation5], %s586_s6  ;;  %s214_s24 = scalar_lea.sflag [#allocation6], %s213_s9 }
  0x1d   : > { %s225_s22 = sshll.u32 %s217_s14, 4  ;;  %p592_p1 = scmp.ge.s32.totalorder %s896_s20, 1  ;;  %s226_s22 = int_to_ptr.vmem [resolvable:$true] %s225_s22 }
  0x1e   : > { %p249_p2 = scmp.lt.s32.totalorder %s896_s20, 3  ;;  %s202_s10 = scalar_lea.hbm %s1103_s0, %s587_s7 }
  0x1f   : > { %s204_s11 = sshll.u32 %s202_s10, 4  ;;  %s194_s14 = scalar_lea.sflag [#allocation3], %s193_s5  ;;  %s205_s11 = int_to_ptr.hbm [resolvable:$true] %s204_s11 }
  0x20   : > { %p1007_p3 = pnand %p592_p1, %p249_p2  ;;  %s236_s29 = scalar_lea.vmem [#allocation7], %s586_s6 }
  0x21   : > { %s221_s12 = scalar_lea.hbm %s1121_s1, %s587_s7  ;;  %s244_s17 = sshll.u32 %s236_s29, 4  ;;  %s245_s17 = int_to_ptr.vmem [resolvable:$true] %s244_s17 }
  0x22   : > { %s223_s13 = sshll.u32 %s221_s12, 4  ;;  %s197_s12 = scalar_lea.vmem [#allocation2], %s586_s6  ;;  %s224_s13 = int_to_ptr.hbm [resolvable:$true] %s223_s13 }
  0x23   : > { %623 = dma.hbm_to_vmem [thread:$0]  (!%p995_p0), %s224_s13, 128, %s226_s22, %s214_s24  }
  0x24   : > { %s206_s1 = sshll.u32 %s197_s12, 4  ;;  %s240_s22 = scalar_lea.hbm %s1105_s2, %s587_s7  ;;  %s207_s1 = int_to_ptr.vmem [resolvable:$true] %s206_s1 }
  0x25   : > { %620 = dma.hbm_to_vmem [thread:$0]  (!%p995_p0), %s205_s11, 128, %s207_s1, %s194_s14  }
  0x26   : > { %s242_s19 = sshll.u32 %s240_s22, 4  ;;  %253 = sbr.rel (%p1007_p3) target bundleno = 560 (0x230), region = 32  ;;  %s243_s19 = int_to_ptr.hbm [resolvable:$true] %s242_s19 }
  0x27   : > { %626 = dma.hbm_to_vmem [thread:$0]  (!%p995_p0), %s243_s19, 128, %s245_s17, %s214_s24  }
  0x28   : > { %s1024_s23 = sand.u32 (!%p1007_p3), 1, %s880_s16  }
  0x29   : > { %s1027_s1 = sshll.u32 (!%p1007_p3), %s1024_s23, 3  ;;  %s256_s5 = scalar_lea.sflag (!%p1007_p3), [#allocation3], %s1024_s23 }
  0x2a   : > { %s259_s7 = scalar_lea.vmem (!%p1007_p3), [#allocation2], %s1027_s1 }
  0x2b   : > { %859 = dma.done.wait (%p974_p8), %s256_s5, 128  }
  0x2c   : > { %861 = vsyncadd (%p974_p8), %s256_s5, 4294967168  ;;  %s265_s17 = sand.u32 1, %s954_s21   ;;  %s269_s29 = scalar_lea.vmem [#allocation5], %s1027_s1 }
  0x2d   : > { %s266_s19 = scalar_lea.sflag [#allocation6], %s265_s17 }
  0x2e   : > { %863 = dma.done.wait (%p974_p8), %s266_s19, 256  }
  0x2f   : > { %865 = vsyncadd (%p974_p8), %s266_s19, 4294967040  ;;  %vm324_vm0 = vcmask 261120   ;;  %v322_v0 = vld [vmem:[%s269_s29] sm:$0xff]  ;;  %v320_v1 = vld [vmem:[%s259_s7] sm:$0xff]  ;;  %vm351_vm1 = vcmask 64512   ;;  %s279_s21 = scalar_lea.vmem [#allocation7], %s1027_s1 }
  0x30   : > { %598 = vmatpush.xpose.msk.msra.mxu0 %vm324_vm0, %v322_v0  ;;  %v321_v2 = vmul.f32 0.17677669, %v320_v1  ;;  %v323_v10 = vld [vmem:[%s279_s21] sm:$0xff]  ;;  %s603_s27 = sshll.u32 %s888_s18, 3  ;;  %s319_s25 = scalar_lea.vmem [#allocation9], %s1027_s1 }
  0x31   : > { %381 = vmatpush.msra.mxu1 %v323_v10  ;;  %s420_s24 = scalar_lea.hbm %s1107_s4, %s603_s27  ;;  %s422_s26 = sshll.u32 %s319_s25, 4  ;;  %s423_s26 = int_to_ptr.vmem [resolvable:$true] %s422_s26 }
  0x32   : > { %s424_s10 = sshll.u32 %s420_s24, 4  ;;  %s394_s11 = scalar_lea.sflag [#allocation10], %s1024_s23  ;;  %s425_s10 = int_to_ptr.hbm [resolvable:$true] %s424_s10 }
  0x33   : > { %599 = vmatmul.msk.f32.vlgmr.msra.gmra.mxu0 %vm324_vm0, %v321_v2  ;;  %s792_s12 = sshra.s32 %s425_s10, 4  ;;  %s798_s13 = scalar_lea.hbm %s1107_s4, 16  ;;  %s793_s12 = int_to_ptr.hbm [resolvable:$true] %s792_s12 }
  0x34   : > { %s794_s18 = scalar_lea.hbm %s793_s12, 8  ;;  %p799_p7 = scmp.lt.s32.totalorder %s793_s12, %s1107_s4 }
  0x35   : > { %p795_p4 = scmp.ne.s32.totalorder %s793_s12, %s794_s18  ;;  %p800_p8 = scmp.lt.s32.totalorder %s798_s13, %s794_s18 }
  0x37   : > { %p796_p5 = pnand %p795_p4, %p978_p9  ;;  %p801_p10 = por %p800_p8, %p799_p7 }
  0x39   : > { %p797_p6 = pneg %p796_p5 }
  0x3b   : > { %p802_p13 = pnand %p801_p10, %p797_p6 }
  0xb0   : > { %v348_v3 = vpop.f32.mrf.mxu0 }
  0xb1   : > { %v352_v4 = vsel %vm351_vm1, %v348_v3, -inf }
  0xb2   : > { %353 = vmax.xlane.f32.xlu0 %v352_v4 }
 0x125   : > { %v354_v5 = vpop.xlane.xlu0 %353 }
 0x126   : > { %v355_v6 = vsub.f32 %v348_v3, %v354_v5 }
 0x128   : > { %v356_v7 = vmul.f32 1.442695, %v355_v6 }
 0x12a   : > { %684 = vpow2.f32 %v356_v7 }
 0x130   : > { %v685_v8 = vpop.eup %684 }
 0x131   : > { %v358_v9 = vsel %vm351_vm1, %v685_v8, 0.0 }
 0x132   : > { %359 = vadd.xlane.f32.xlu0 %v358_v9 }
 0x1a5   : > { %v360_v11 = vpop.xlane.xlu0 %359 }
 0x1a6   : > { %686 = vrcp.f32 %v360_v11 }
 0x1ac   : > { %v687_v12 = vpop.eup %686 }
 0x1ad   : > { %v362_v13 = vmul.f32 %v687_v12, %v685_v8 }
 0x1af   : > { %600 = vmatmul.msk.f32.vlgmr.msra.gmra.mxu1 %vm351_vm1, %v362_v13  ;;  %386 = vst.msk [vmem:[%s319_s25] sm:$0xff] %vm351_vm1, %v362_v13 }
 0x1b0   : > { %805 = shalt.err (!%p802_p13)
}
 0x1b1   : > { %614 = dma.vmem_to_hbm [thread:$0]  (%p978_p9), %s423_s26, 128, %s425_s10, %s394_s11  }
 0x1b2   : > { %s405_s19 = scalar_lea.hbm %s1106_s3, %s603_s27  ;;  %s312_s29 = scalar_lea.vmem [#allocation8], %s1027_s1 }
 0x1b3   : > { %s407_s21 = sshll.u32 %s312_s29, 4  ;;  %s409_s6 = sshll.u32 %s405_s19, 4  ;;  %s408_s21 = int_to_ptr.vmem [resolvable:$true] %s407_s21  ;;  %s410_s6 = int_to_ptr.hbm [resolvable:$true] %s409_s6 }
 0x1b4   : > { %s389_s8 = scalar_lea.sflag [#allocation4], %s1024_s23  ;;  %s820_s24 = sshra.s32 %s410_s6, 4  ;;  %s821_s24 = int_to_ptr.hbm [resolvable:$true] %s820_s24 }
 0x1b5   : > { %s822_s25 = scalar_lea.hbm %s821_s24, 8  ;;  %s826_s27 = scalar_lea.hbm %s1106_s3, 16 }
 0x1b6   : > { %p823_p0 = scmp.ne.s32.totalorder %s821_s24, %s822_s25  ;;  %p827_p3 = scmp.lt.s32.totalorder %s821_s24, %s1106_s3 }
 0x1b7   : > { %p828_p4 = scmp.lt.s32.totalorder %s826_s27, %s822_s25 }
 0x1b8   : > { %p824_p1 = pnand %p823_p0, %p978_p9 }
 0x1b9   : > { %p829_p5 = por %p828_p4, %p827_p3 }
 0x1ba   : > { %p825_p2 = pneg %p824_p1 }
 0x1bc   : > { %p830_p6 = pnand %p829_p5, %p825_p2 }
 0x22c   : > { %v383_v14 = vpop.f32.mrf.mxu1 }
 0x22d   : > { %387 = vst.msk [vmem:[%s312_s29] sm:$0xff] %vm324_vm0, %v383_v14 }
 0x22e   : > { %833 = shalt.err (!%p830_p6)
}
 0x22f   : > { %613 = dma.vmem_to_hbm [thread:$0]  (%p978_p9), %s408_s21, 128, %s410_s6, %s389_s8  }
 0x230 PF: > { %s436_s23 = sand.u32 1, %s876_s15   ;;  %p628_p7 = pnand %p585_p12, %p985_p11 }
 0x231   : > { %s437_s12 = scalar_lea.sflag [#allocation4], %s436_s23 }
 0x232   : > { %p629_p8 = pneg %p628_p7 }
 0x234   : > { %867 = dma.done.wait (%p629_p8), %s437_s12, 128  }
 0x235   : > { %869 = vsyncadd (%p629_p8), %s437_s12, 4294967168  ;;  %s447_s18 = scalar_lea.sflag [#allocation10], %s436_s23 }
 0x236   : > { %871 = dma.done.wait (%p629_p8), %s447_s18, 128  }
 0x237   : > { %873 = vsyncadd (%p629_p8), %s447_s18, 4294967168  ;;  %s27_s20 = sadd.s32 1, %s896_s20   ;;  %s1123_s28 = sld [smem:[#allocation15_spill]] }
 0x238   : > { %p24_p10 = scmp.ge.s32.totalorder %s27_s20, 4   ;;  %s1124_s17 = sld [smem:[#allocation18_spill]] }
 0x239   : > { %s1125_s18 = sld [smem:[#allocation16_spill]]  ;;  %s1127_s15 = smov %s880_s16 }
 0x23a   : > { %s1126_s19 = sld [smem:[#allocation17_spill]]  ;;  %26 = sbr.rel (!%p24_p10) target bundleno = 12 (0xc), region = 118 }
 0x23d   : > { %s1128_s16 = smov %s1123_s28 }
 0x23f   :  { %453 = vsyncpa [#allocation3], 1 }
 0x240   :  { %455 = vsyncpa [#allocation3 + $0x1], 1 }
 0x241   :  { %456 = vsyncpa [#allocation6], 1 }
 0x242   :  { %458 = vsyncpa [#allocation6 + $0x1], 1 }
 0x243   :  { %459 = vsyncpa [#allocation4], 1 }
 0x244   :  { %461 = vsyncpa [#allocation4 + $0x1], 1 }
 0x245   :  { %462 = vsyncpa [#allocation10], 1 }
 0x246   :  { %464 = vsyncpa [#allocation10 + $0x1], 1 }

</bundles_post_ra>
